<compile_context>
chip_gen: v7x
topology: tpu7x:2x2x1
jax: 0.10.0
libtpu: 0.0.40
codegen_flags: <defaults>
</compile_context>

<pallas_src>
import jax
import jax.numpy as jnp
from jax import lax
from jax.experimental import pallas as pl
from jax.experimental.pallas import tpu as pltpu


def _prediction_kernel(x_ref, w_ref, t_ref, o_ref):
    # x_ref : (TM, H)  row tile of flattened (batch*pedestrian) cell states
    # w_ref : (R, H)   fc.weight, resident across grid steps
    # t_ref : (R, TM)  target traces, transposed so the large row axis is lane-dense
    # o_ref : (R, TM)  output tile in the same lane-dense layout
    proj = lax.dot_general(
        w_ref[...],
        x_ref[...],
        dimension_numbers=(((1,), (1,)), ((), ())),  # contract H with H -> (R, TM)
        preferred_element_type=jnp.float32,
    )
    o_ref[...] = (proj + t_ref[...]).astype(o_ref.dtype)


def prediction_net_forward(cell_states, target_traces, fc_weight, *, tile_rows=1024):
    """
    cell_states  : [B, P, H]
    target_traces: [B, P, R]
    fc_weight    : [R, H]    (torch nn.Linear.weight convention)
    returns      : [B, P, R]
    """
    B, P, H = cell_states.shape
    R = fc_weight.shape[0]
    rows = B * P

    # Row tiling: one full-array block for small problems, otherwise TM-row
    # pipelined tiles (TM is a multiple of 8 and 128 so blocks stay legal).
    if rows <= tile_rows:
        tm = max(8, ((rows + 7) // 8) * 8)
    else:
        tm = tile_rows
    rows_p = ((rows + tm - 1) // tm) * tm
    grid = (rows_p // tm,)

    x2d = cell_states.reshape(rows, H)
    t2d_t = target_traces.reshape(rows, R).T  # (R, rows): lane-dense layout

    if rows_p != rows:
        x2d = jnp.pad(x2d, ((0, rows_p - rows), (0, 0)))
        t2d_t = jnp.pad(t2d_t, ((0, 0), (0, rows_p - rows)))

    itemsize = jnp.dtype(cell_states.dtype).itemsize
    cost = pl.CostEstimate(
        flops=2 * rows_p * H * R,
        transcendentals=0,
        bytes_accessed=itemsize * (rows_p * H + 2 * rows_p * R + R * H),
    )

    out_t = pl.pallas_call(
        _prediction_kernel,
        out_shape=jax.ShapeDtypeStruct((R, rows_p), cell_states.dtype),
        grid_spec=pltpu.PrefetchScalarGridSpec(
            num_scalar_prefetch=0,
            grid=grid,
            in_specs=[
                pl.BlockSpec((tm, H), lambda i: (i, 0)),   # cell-state row tile
                pl.BlockSpec((R, H), lambda i: (0, 0)),    # weight (resident)
                pl.BlockSpec((R, tm), lambda i: (0, i)),   # traces tile (lane-dense)
            ],
            out_specs=pl.BlockSpec((R, tm), lambda i: (0, i)),
        ),
        compiler_params=pltpu.CompilerParams(
            dimension_semantics=("parallel",),
        ),
        cost_estimate=cost,
        input_output_aliases={2: 0},  # in-place: traces += projection
    )(x2d, fc_weight, t2d_t)

    return out_t[:, :rows].T.reshape(B, P, R)


def _reference(cell_states, target_traces, fc_weight):
    # Pure-JAX reference mirroring the PyTorch loop.
    return jnp.einsum("bph,rh->bpr", cell_states, fc_weight) + target_traces


if __name__ == "__main__":
    fwd = jax.jit(prediction_net_forward)

    # --- Small configuration matching the module defaults -------------------
    batch = 2
    pedestrian_num = 4
    hidden_size = 32
    regression_size = 2

    key = jax.random.PRNGKey(0)
    k1, k2, k3 = jax.random.split(key, 3)

    cell_states = jax.random.normal(
        k1, (batch, pedestrian_num, hidden_size), dtype=jnp.float32
    )
    target_traces = jax.random.normal(
        k2, (batch, pedestrian_num, regression_size), dtype=jnp.float32
    )
    fc_weight = (
        jax.random.normal(k3, (regression_size, hidden_size), dtype=jnp.float32)
        * (1.0 / jnp.sqrt(hidden_size))
    )

    out = jax.block_until_ready(fwd(cell_states, target_traces, fc_weight))
    ref = _reference(cell_states, target_traces, fc_weight)
    assert out.shape == (batch, pedestrian_num, regression_size)
    assert jnp.allclose(out, ref, atol=1e-5, rtol=1e-5), "mismatch vs reference (small)"

    # --- Larger ragged configuration to exercise the tiled + padded path ----
    batch2, ped2 = 3, 700  # rows = 2100 > 1024 and not a multiple of the tile
    k4, k5 = jax.random.split(k3)
    cs2 = jax.random.normal(k4, (batch2, ped2, hidden_size), dtype=jnp.float32)
    tt2 = jax.random.normal(k5, (batch2, ped2, regression_size), dtype=jnp.float32)

    out2 = jax.block_until_ready(fwd(cs2, tt2, fc_weight))
    ref2 = _reference(cs2, tt2, fc_weight)
    assert out2.shape == (batch2, ped2, regression_size)
    assert jnp.allclose(out2, ref2, atol=1e-4, rtol=1e-4), "mismatch vs reference (tiled)"

    print("KERNEL_OK")
</pallas_src>

<mosaic_0001>
module attributes {stable_mosaic.version = 11 : i64} {
  func.func @_prediction_kernel(%arg0: i32, %arg1: memref<8x32xf32, #tpu.memory_space<vmem>>, %arg2: memref<2x32xf32, #tpu.memory_space<vmem>>, %arg3: memref<2x8xf32, #tpu.memory_space<vmem>>, %arg4: memref<2x8xf32, #tpu.memory_space<vmem>>) attributes {dimension_semantics = [#tpu.dimension_semantics<parallel>], iteration_bounds = array<i64: 1>, scalar_prefetch = 0 : i64, scratch_operands = 0 : i64, tpu.core_type = #tpu.core_type<tc>, window_params = [{transform_indices = @transform_0, window_bounds = array<i64: 8, 32>}, {pipeline_mode = #tpu.pipeline_mode<synchronous>, transform_indices = @transform_1, window_bounds = array<i64: 2, 32>}, {transform_indices = @transform_2, window_bounds = array<i64: 2, 8>}, {transform_indices = @transform_3, window_bounds = array<i64: 2, 8>}]} {
    %c0 = arith.constant 0 : index
    %c0_0 = arith.constant 0 : index
    %0 = vector.load %arg2[%c0, %c0_0] : memref<2x32xf32, #tpu.memory_space<vmem>>, vector<2x32xf32>
    %c0_1 = arith.constant 0 : index
    %c0_2 = arith.constant 0 : index
    %1 = vector.load %arg1[%c0_1, %c0_2] : memref<8x32xf32, #tpu.memory_space<vmem>>, vector<8x32xf32>
    %cst = arith.constant dense<0.000000e+00> : vector<2x8xf32>
    %2 = tpu.matmul %0, %1, %cst {dimension_numbers = #tpu.dot_dimension_numbers<[1], [1], [0], [0], [0, 0, 1, 0], [], []>} : vector<2x32xf32>, vector<8x32xf32>, vector<2x8xf32> -> vector<2x8xf32>
    %c0_3 = arith.constant 0 : index
    %c0_4 = arith.constant 0 : index
    %3 = vector.load %arg3[%c0_3, %c0_4] : memref<2x8xf32, #tpu.memory_space<vmem>>, vector<2x8xf32>
    %4 = arith.addf %2, %3 : vector<2x8xf32>
    %c0_5 = arith.constant 0 : index
    %c0_6 = arith.constant 0 : index
    %5 = vector.load %arg4[%c0_5, %c0_6] : memref<2x8xf32, #tpu.memory_space<vmem>>, vector<2x8xf32>
    tpu.vector_store %arg4[%c0_5, %c0_6], %4 {strides = array<i32>} : memref<2x8xf32, #tpu.memory_space<vmem>>, vector<2x8xf32>,
    return
  }
  func.func @transform_0(%arg0: i32) -> (i32, i32) {
    %c0_i32 = arith.constant 0 : i32
    %c0_i32_0 = arith.constant 0 : i32
    return %arg0, %c0_i32 : i32, i32
  }
  func.func @transform_1(%arg0: i32) -> (i32, i32) {
    %c0_i32 = arith.constant 0 : i32
    %c0_i32_0 = arith.constant 0 : i32
    %c0_i32_1 = arith.constant 0 : i32
    return %c0_i32, %c0_i32_0 : i32, i32
  }
  func.func @transform_2(%arg0: i32) -> (i32, i32) {
    %c0_i32 = arith.constant 0 : i32
    %c0_i32_0 = arith.constant 0 : i32
    return %c0_i32, %arg0 : i32, i32
  }
  func.func @transform_3(%arg0: i32) -> (i32, i32) {
    %c0_i32 = arith.constant 0 : i32
    %c0_i32_0 = arith.constant 0 : i32
    return %c0_i32, %arg0 : i32, i32
  }
}

</mosaic_0001>

<bundles_post_ra>
// kernel: prediction_net_forward.1
= control target key start
LH: loop header
LB: loop body
LE: loop exit
PB: predicated region body
PF: predicated region fallthrough
CT: control target
= control target key end

     0   :  { %vm17_vm0 = vcmask 261120   ;;  %v111_v0 = vmov 0.0   ;;  %vm112_vm1 = vmmov 0   ;;  %vm94_vm2 = vcmask 58368   ;;  %s145_s0 = inlined_call_operand.vmem [shape: f32[8,32], index: 0, kind: input, shape index: {}]   ;;  %s146_s1 = inlined_call_operand.vmem [shape: f32[2,32], index: 1, kind: input, shape index: {}]   ;;  %s147_s2 = inlined_call_operand.vmem [shape: f32[2,8], index: 2, kind: input, shape index: {}, may-alias: {2,3}]   ;;  %s148_s3 = inlined_call_operand.vmem [shape: f32[2,8], index: 3, kind: output, shape index: {}, may-alias: {2,3}]  }
   0x1   :  { %104 = vmatprep.subr.mxu0 %v111_v0  ;;  %v15_v1 = vld [vmem:[%s145_s0] sm:$0xff]  ;;  %106 = vmatprep.mubr.msk.f32.mxu0 %vm112_vm1, %v111_v0 }
   0x2   :  { %105 = vmatpush3.xpose.msk.msra.mxu0 %vm17_vm0, %v15_v1  ;;  %v14_v2 = vld [vmem:[%s146_s1] sm:$0x3] }
   0x3   :  { %v16_v3 = vld [vmem:[%s147_s2] sm:$0x3] }
   0x5   :  { %107 = vmatmul.mubr.msk.f32.vlgmr.msra.gmra.mrb[0].mxu0 %vm17_vm0, %v14_v2 }
  0xd8   :  { %v90_v4 = vpop.f32.mrb[0].mxu0 }
  0xd9   :  { %v91_v5 = vadd.f32 %v90_v4, %v16_v3  ;;  %v108_v6 = vpop.f32.mrb[1].mxu0 }
  0xdb   :  { %95 = vst.msk [vmem:[%s148_s3] sm:$0x3] %vm94_vm2, %v91_v5 }

</bundles_post_ra>
